<compile_context>
chip_gen: v5e
topology: v5e:2x2
jax: 0.10.0
libtpu: 0.0.40
codegen_flags: <defaults>
</compile_context>

<pallas_src>
import functools

import jax
import jax.numpy as jnp
from jax.experimental import pallas as pl
from jax.experimental.pallas import tpu as pltpu

_MIB = 1024 * 1024


def _round_up(x, m):
    return ((x + m - 1) // m) * m


def _tpu_vmem_capacity_bytes():
    """Physical VMEM per TensorCore; conservative (v7x) fallback if unknown."""
    try:
        info = pltpu.get_tpu_info()
        cap = getattr(info, "vmem_capacity_bytes", None)
        if cap:
            return int(cap)
    except Exception:
        pass
    return 64 * _MIB


def _lane_chunk_sum(loss, block_n):
    """(block_b, block_n) -> (block_b, 128) partial sum using only VPU adds on
    128-lane-aligned static slices (no cross-lane XLU work per grid step)."""
    parts = [loss[:, j * 128:(j + 1) * 128] for j in range(block_n // 128)]
    while len(parts) > 1:
        nxt = [parts[i] + parts[i + 1] for i in range(0, len(parts) - 1, 2)]
        if len(parts) % 2:
            nxt.append(parts[-1])
        parts = nxt
    return parts[0]


def _bce_kernel(*refs, with_mask, inv_n, block_n, n_valid, needs_col_mask):
    if with_mask:
        x_ref, t_ref, w_ref, o_ref, acc_ref = refs
    else:
        x_ref, t_ref, o_ref, acc_ref = refs

    k = pl.program_id(1)
    k_last = pl.num_programs(1) - 1

    @pl.when(k == 0)
    def _():
        acc_ref[...] = jnp.zeros_like(acc_ref)

    x = x_ref[...].astype(jnp.float32)
    z = t_ref[...].astype(jnp.float32)
    # PyTorch-stable BCE-with-logits.
    loss = jnp.maximum(x, 0.0) - x * z + jnp.log1p(jnp.exp(-jnp.abs(x)))
    if with_mask:
        loss = loss * w_ref[...].astype(jnp.float32)

    if needs_col_mask:
        # Only the LAST N block contains out-of-bounds (garbage) columns; keep
        # the iota/compare/select off the interior tiles. jnp.where (not a
        # multiply) so garbage Inf/NaN in padded columns cannot leak through.
        @pl.when(k != k_last)
        def _():
            acc_ref[...] += _lane_chunk_sum(loss, block_n)

        @pl.when(k == k_last)
        def _():
            col = k * block_n + jax.lax.broadcasted_iota(jnp.int32, loss.shape, 1)
            acc_ref[...] += _lane_chunk_sum(
                jnp.where(col < n_valid, loss, 0.0), block_n)
    else:
        acc_ref[...] += _lane_chunk_sum(loss, block_n)

    @pl.when(k == k_last)
    def _():
        # Single cross-lane reduce + lane-sparse store per B block.
        # PyTorch mean(dim=1): divide by the FULL N.
        o_ref[...] = jnp.sum(acc_ref[...], axis=1, keepdims=True) * jnp.float32(inv_n)


def sigmoid_bce_loss(inputs, target, mask=None, *, block_b=None, block_n=None):
    """Pallas equivalent of SigmoidBCELoss.forward. inputs/target/mask: (B, N) -> (B,)."""
    B, N = inputs.shape
    with_mask = mask is not None
    n_streams = 3 if with_mask else 2
    itemsize = jnp.dtype(inputs.dtype).itemsize

    vmem_cap = _tpu_vmem_capacity_bytes()
    big_vmem = vmem_cap >= 100 * _MIB  # v5e/v6e (128 MiB) vs v7x (64 MiB)

    # Sublane tile: multiple of 8; >= 2 blocks along B whenever B >= 16 so the
    # "parallel" B axis shards across both TensorCores on v7x; cap at 512.
    if block_b is None:
        block_b = min(512, max(8, _round_up(-(-B // 2), 8)))
    else:
        block_b = max(8, _round_up(block_b, 8))

    # Lane tile: byte-budgeted per stream per pipeline buffer, dtype aware
    # (bf16 inputs double block_n for the same VMEM footprint).
    n_lane_full = _round_up(N, 128)
    if block_n is None:
        per_stream_budget = (4 if big_vmem else 2) * _MIB
        block_n = (per_stream_budget // (block_b * itemsize)) // 128 * 128
        block_n = int(max(128, min(block_n, n_lane_full, 8192)))
    else:
        block_n = min(max(128, _round_up(block_n, 128)), n_lane_full)

    grid = (pl.cdiv(B, block_b), pl.cdiv(N, block_n))
    needs_col_mask = (N % block_n) != 0

    operands = [inputs, target]
    if with_mask:
        operands.append(mask)

    kernel = functools.partial(
        _bce_kernel,
        with_mask=with_mask,
        inv_n=1.0 / N,
        block_n=block_n,
        n_valid=N,
        needs_col_mask=needs_col_mask,
    )

    in_spec = pl.BlockSpec((block_b, block_n), lambda i, k: (i, k))
    out_spec = pl.BlockSpec((block_b, 1), lambda i, k: (i, 0))

    # Double-buffered pipeline footprint + headroom for elementwise temporaries,
    # generation-gated: never above ~80 MiB (v5e/v6e) nor physical-minus-slack
    # on v7x (64 MiB/TC).
    pipeline_bytes = n_streams * 2 * block_b * block_n * itemsize
    headroom_cap = max(32 * _MIB, vmem_cap - 16 * _MIB)
    vmem_limit = int(min(max(32 * _MIB, 4 * pipeline_bytes), 80 * _MIB, headroom_cap))

    out = pl.pallas_call(
        kernel,
        out_shape=jax.ShapeDtypeStruct((B, 1), jnp.float32),
        grid_spec=pltpu.PrefetchScalarGridSpec(
            num_scalar_prefetch=0,
            grid=grid,
            in_specs=[in_spec] * len(operands),
            out_specs=out_spec,
            scratch_shapes=[pltpu.VMEM((block_b, 128), jnp.float32)],
        ),
        compiler_params=pltpu.CompilerParams(
            dimension_semantics=("parallel", "arbitrary"),
            vmem_limit_bytes=vmem_limit,
        ),
    )(*operands)
    return out[:, 0]  # (B,)


def _reference(inputs, target, mask=None):
    x = inputs.astype(jnp.float32)
    z = target.astype(jnp.float32)
    loss = jnp.maximum(x, 0.0) - x * z + jnp.log1p(jnp.exp(-jnp.abs(x)))
    if mask is not None:
        loss = loss * mask.astype(jnp.float32)
    return loss.mean(axis=1)


if __name__ == "__main__":
    # SigmoidBCELoss has no parameters (empty __init__), so nothing to init.
    key = jax.random.PRNGKey(0)
    k1, k2, k3, k4, k5, k6 = jax.random.split(key, 6)

    # Case 1: aligned shapes, f32, masked + unmasked paths.
    B, N = 8, 128
    inputs = jax.random.normal(k1, (B, N), dtype=jnp.float32) * 3.0
    target = jax.random.bernoulli(k2, 0.5, (B, N)).astype(jnp.float32)
    mask = jax.random.bernoulli(k3, 0.8, (B, N)).astype(jnp.float32)

    out_m = jax.block_until_ready(sigmoid_bce_loss(inputs, target, mask))
    out_p = jax.block_until_ready(sigmoid_bce_loss(inputs, target, None))
    assert out_m.shape == (B,) and out_p.shape == (B,)
    assert jnp.allclose(out_m, _reference(inputs, target, mask), atol=1e-5, rtol=1e-5)
    assert jnp.allclose(out_p, _reference(inputs, target, None), atol=1e-5, rtol=1e-5)

    # Case 2: ragged shapes with small explicit tiles — exercises partial edge
    # blocks along B and N, the multi-step N accumulation, and the gated
    # last-block column mask (no wrapper padding anywhere).
    B2, N2 = 10, 300
    inputs2 = jax.random.normal(k4, (B2, N2), dtype=jnp.float32) * 2.0
    target2 = jax.random.bernoulli(k5, 0.5, (B2, N2)).astype(jnp.float32)
    mask2 = jax.random.bernoulli(k6, 0.7, (B2, N2)).astype(jnp.float32)

    out2_m = jax.block_until_ready(
        sigmoid_bce_loss(inputs2, target2, mask2, block_b=8, block_n=128))
    out2_p = jax.block_until_ready(
        sigmoid_bce_loss(inputs2, target2, None, block_b=8, block_n=128))
    assert out2_m.shape == (B2,) and out2_p.shape == (B2,)
    assert jnp.allclose(out2_m, _reference(inputs2, target2, mask2), atol=1e-5, rtol=1e-5)
    assert jnp.allclose(out2_p, _reference(inputs2, target2, None), atol=1e-5, rtol=1e-5)

    # Case 3: same ragged shapes with the auto (byte-budgeted) tile heuristic.
    out3_m = jax.block_until_ready(sigmoid_bce_loss(inputs2, target2, mask2))
    out3_p = jax.block_until_ready(sigmoid_bce_loss(inputs2, target2, None))
    assert jnp.allclose(out3_m, _reference(inputs2, target2, mask2), atol=1e-5, rtol=1e-5)
    assert jnp.allclose(out3_p, _reference(inputs2, target2, None), atol=1e-5, rtol=1e-5)

    # Case 4: bf16 inputs (dtype-aware block_n; kernel math stays f32).
    inputs_bf = inputs.astype(jnp.bfloat16)
    target_bf = target.astype(jnp.bfloat16)
    out_bf = jax.block_until_ready(sigmoid_bce_loss(inputs_bf, target_bf, None))
    assert jnp.allclose(out_bf, _reference(inputs_bf, target_bf, None),
                        atol=1e-5, rtol=1e-5)

    print("KERNEL_OK")
</pallas_src>

<mosaic_0001>
module attributes {stable_mosaic.version = 11 : i64} {
  func.func @_bce_kernel(%arg0: i32, %arg1: i32, %arg2: memref<8x128xf32, #tpu.memory_space<vmem>>, %arg3: memref<8x128xf32, #tpu.memory_space<vmem>>, %arg4: memref<8x128xf32, #tpu.memory_space<vmem>>, %arg5: memref<8x1xf32, #tpu.memory_space<vmem>>, %arg6: memref<8x128xf32, #tpu.memory_space<vmem>>) attributes {dimension_semantics = [#tpu.dimension_semantics<parallel>, #tpu.dimension_semantics<arbitrary>], iteration_bounds = array<i64: 1, 1>, scalar_prefetch = 0 : i64, scratch_operands = 1 : i64, tpu.core_type = #tpu.core_type<tc>, window_params = [{transform_indices = @transform_0, window_bounds = array<i64: 8, 128>}, {transform_indices = @transform_1, window_bounds = array<i64: 8, 128>}, {transform_indices = @transform_2, window_bounds = array<i64: 8, 128>}, {transform_indices = @transform_3, window_bounds = array<i64: 8, 1>}]} {
    %c0_i32 = arith.constant 0 : i32
    %0 = arith.cmpi eq, %arg1, %c0_i32 : i32
    %1 = arith.extui %0 : i1 to i32
    %c0_i32_0 = arith.constant 0 : i32
    %2 = arith.cmpi ne, %1, %c0_i32_0 : i32
    scf.if %2 {
      %cst_13 = arith.constant 0.000000e+00 : f32
      %23 = vector.broadcast %cst_13 : f32 to vector<8x128xf32>
      %c0_14 = arith.constant 0 : index
      %c0_15 = arith.constant 0 : index
      %24 = vector.load %arg6[%c0_14, %c0_15] : memref<8x128xf32, #tpu.memory_space<vmem>>, vector<8x128xf32>
      tpu.vector_store %arg6[%c0_14, %c0_15], %23 {strides = array<i32>} : memref<8x128xf32, #tpu.memory_space<vmem>>, vector<8x128xf32>,
    } else {
    }
    %c0 = arith.constant 0 : index
    %c0_1 = arith.constant 0 : index
    %3 = vector.load %arg2[%c0, %c0_1] : memref<8x128xf32, #tpu.memory_space<vmem>>, vector<8x128xf32>
    %c0_2 = arith.constant 0 : index
    %c0_3 = arith.constant 0 : index
    %4 = vector.load %arg3[%c0_2, %c0_3] : memref<8x128xf32, #tpu.memory_space<vmem>>, vector<8x128xf32>
    %cst = arith.constant 0.000000e+00 : f32
    %5 = vector.broadcast %cst : f32 to vector<8x128xf32>
    %6 = arith.maximumf %3, %5 : vector<8x128xf32>
    %7 = arith.mulf %3, %4 : vector<8x128xf32>
    %8 = arith.subf %6, %7 : vector<8x128xf32>
    %9 = math.absf %3 : vector<8x128xf32>
    %cst_4 = arith.constant 0.000000e+00 : f32
    %10 = vector.broadcast %cst_4 : f32 to vector<8x128xf32>
    %11 = arith.subf %10, %9 : vector<8x128xf32>
    %12 = math.exp %11 : vector<8x128xf32>
    %13 = math.log1p %12 : vector<8x128xf32>
    %14 = arith.addf %8, %13 : vector<8x128xf32>
    %c0_5 = arith.constant 0 : index
    %c0_6 = arith.constant 0 : index
    %15 = vector.load %arg4[%c0_5, %c0_6] : memref<8x128xf32, #tpu.memory_space<vmem>>, vector<8x128xf32>
    %16 = arith.mulf %14, %15 : vector<8x128xf32>
    %c0_7 = arith.constant 0 : index
    %c0_8 = arith.constant 0 : index
    %17 = vector.load %arg6[%c0_7, %c0_8] : memref<8x128xf32, #tpu.memory_space<vmem>>, vector<8x128xf32>
    %18 = arith.addf %17, %16 : vector<8x128xf32>
    %c0_9 = arith.constant 0 : index
    %c0_10 = arith.constant 0 : index
    %19 = vector.load %arg6[%c0_9, %c0_10] : memref<8x128xf32, #tpu.memory_space<vmem>>, vector<8x128xf32>
    tpu.vector_store %arg6[%c0_9, %c0_10], %18 {strides = array<i32>} : memref<8x128xf32, #tpu.memory_space<vmem>>, vector<8x128xf32>,
    %c0_i32_11 = arith.constant 0 : i32
    %20 = arith.cmpi eq, %arg1, %c0_i32_11 : i32
    %21 = arith.extui %20 : i1 to i32
    %c0_i32_12 = arith.constant 0 : i32
    %22 = arith.cmpi ne, %21, %c0_i32_12 : i32
    scf.if %22 {
      %c0_13 = arith.constant 0 : index
      %c0_14 = arith.constant 0 : index
      %23 = vector.load %arg6[%c0_13, %c0_14] : memref<8x128xf32, #tpu.memory_space<vmem>>, vector<8x128xf32>
      %cst_15 = arith.constant dense<0.000000e+00> : vector<8xf32>
      %24 = vector.multi_reduction <add>, %23, %cst_15 [1] : vector<8x128xf32> to vector<8xf32>
      %25 = vector.shape_cast %24 : vector<8xf32> to vector<8x1xf32>
      %cst_16 = arith.constant 7.812500e-03 : f32
      %26 = vector.broadcast %cst_16 : f32 to vector<8x1xf32>
      %27 = arith.mulf %25, %26 : vector<8x1xf32>
      %c0_17 = arith.constant 0 : index
      %c0_18 = arith.constant 0 : index
      %28 = vector.load %arg5[%c0_17, %c0_18] : memref<8x1xf32, #tpu.memory_space<vmem>>, vector<8x1xf32>
      tpu.vector_store %arg5[%c0_17, %c0_18], %27 {strides = array<i32>} : memref<8x1xf32, #tpu.memory_space<vmem>>, vector<8x1xf32>,
    } else {
    }
    return
  }
  func.func @transform_0(%arg0: i32, %arg1: i32) -> (i32, i32) {
    %c0_i32 = arith.constant 0 : i32
    return %arg0, %arg1 : i32, i32
  }
  func.func @transform_1(%arg0: i32, %arg1: i32) -> (i32, i32) {
    %c0_i32 = arith.constant 0 : i32
    return %arg0, %arg1 : i32, i32
  }
  func.func @transform_2(%arg0: i32, %arg1: i32) -> (i32, i32) {
    %c0_i32 = arith.constant 0 : i32
    return %arg0, %arg1 : i32, i32
  }
  func.func @transform_3(%arg0: i32, %arg1: i32) -> (i32, i32) {
    %c0_i32 = arith.constant 0 : i32
    %c0_i32_0 = arith.constant 0 : i32
    return %arg0, %c0_i32 : i32, i32
  }
}

</mosaic_0001>

<bundles_post_ra>
// kernel: tpu_custom_call.1
= control target key start
LH: loop header
LB: loop body
LE: loop exit
PB: predicated region body
PF: predicated region fallthrough
CT: control target
= control target key end

     0   :  { %8 = vsyncpa [#allocation4], 0  ;;  %s217_s0 = inlined_call_operand.hbm [shape: f32[8,128], index: 0, kind: input, shape index: {}]   ;;  %s218_s1 = inlined_call_operand.hbm [shape: f32[8,128], index: 1, kind: input, shape index: {}]   ;;  %s219_s2 = inlined_call_operand.hbm [shape: f32[8,128], index: 2, kind: input, shape index: {}]   ;;  %s220_s3 = inlined_call_operand.vmem [shape: f32[8,1], index: 3, kind: output, shape index: {}]  }
   0x1   :  { %9 = vsyncpa [#allocation6], 0  ;;  %s26_s14 = sshll.u32 %s218_s1, 4  ;;  %s182_s15 = smov [#allocation5]   ;;  %s27_s14 = int_to_ptr.hbm [resolvable:$true] %s26_s14 }
   0x2   :  { %s28_s16 = sshll.u32 %s182_s15, 4  ;;  %s15_s19 = sshll.u32 %s217_s0, 4  ;;  %s29_s16 = int_to_ptr.vmem [resolvable:$true] %s28_s16  ;;  %s16_s19 = int_to_ptr.hbm [resolvable:$true] %s15_s19 }
   0x3   :  { %31 = dma.hbm_to_vmem [thread:$0]  %s27_s14, 128, %s29_s16, [#allocation6]  }
   0x4   :  { %s183_s20 = smov [#allocation3]   ;;  %s37_s24 = sshll.u32 %s219_s2, 4  ;;  %s38_s24 = int_to_ptr.hbm [resolvable:$true] %s37_s24 }
   0x5   :  { %s17_s21 = sshll.u32 %s183_s20, 4  ;;  %s184_s1 = smov [#allocation7]   ;;  %s18_s21 = int_to_ptr.vmem [resolvable:$true] %s17_s21 }
   0x6   :  { %20 = dma.hbm_to_vmem [thread:$0]  %s16_s19, 128, %s18_s21, [#allocation4]  }
   0x7   :  { %s39_s25 = sshll.u32 %s184_s1, 4  ;;  %s40_s25 = int_to_ptr.vmem [resolvable:$true] %s39_s25 }
   0x8   :  { %42 = dma.hbm_to_vmem [thread:$0]  %s38_s24, 128, %s40_s25, [#allocation6]  }
   0x9   :  { %178 = dma.done.wait [#allocation4], 128  }
   0xa   :  { %179 = vsyncadd [#allocation4], 4294967168 }
   0xb   :  { %180 = dma.done.wait [#allocation6], 256  }
   0xc   :  { %181 = vsyncadd [#allocation6], 4294967040  ;;  %v60_v0 = vld [vmem:[#allocation3] sm:$0xff]  ;;  %v61_v7 = vld [vmem:[#allocation5] sm:$0xff]  ;;  %vm91_vm1 = vcmask 7168  }
   0xd   :  { %v65_v1 = vand.u32 2147483647, %v60_v0  ;;  %v62_v9 = vmax.f32 %v60_v0, 0.0  ;;  %v63_v10 = vmul.f32 %v61_v7, %v60_v0  ;;  %v79_v17 = vld [vmem:[#allocation7] sm:$0xff] }
   0xf   :  { %v66_v2 = vsub.f32 0.0, %v65_v1  ;;  %v64_v14 = vsub.f32 %v62_v9, %v63_v10 }
  0x11   :  { %v67_v3 = vmul.f32 1.442695, %v66_v2 }
  0x13   :  { %102 = vpow2.f32 %v67_v3 }
  0x19   :  { %v103_v4 = vpop.eup %102 }
  0x1a   :  { %v69_v5 = vadd.f32 1.0, %v103_v4  ;;  %v72_v6 = vmul.f32 -0.5, %v103_v4  ;;  %v75_v11 = vand.u32 2147483647, %v103_v4 }
  0x1c   :  { %104 = vlog2.f32 %v69_v5  ;;  %v73_v8 = vadd.f32 1.0, %v72_v6  ;;  %vm76_vm0 = vcmp.lt.f32.partialorder %v75_v11, 0.0004427343 }
  0x1e   :  { %v74_v12 = vmul.f32 %v103_v4, %v73_v8 }
  0x22   :  { %v105_v13 = vpop.eup %104 }
  0x23   :  { %v71_v15 = vmul.f32 0.6931472, %v105_v13 }
  0x25   :  { %v77_v16 = vsel %vm76_vm0, %v74_v12, %v71_v15 }
  0x26   :  { %v78_v18 = vadd.f32 %v77_v16, %v64_v14 }
  0x28   :  { %v80_v19 = vmul.f32 %v79_v17, %v78_v18 }
  0x2a   :  { %88 = vadd.xlane.f32.xlu0 %v80_v19 }
  0x9d   :  { %v89_v20 = vpop.xlane.xlu0 %88 }
  0x9e   :  { %v90_v21 = vmul.f32 0.0078125, %v89_v20 }
  0xa0   :  { %92 = vst.msk [vmem:[%s220_s3] sm:$0xff] %vm91_vm1, %v90_v21 }
  0xa1   :  { %97 = vsyncpa [#allocation4], 1 }
  0xa2   :  { %98 = vsyncpa [#allocation6], 1 }

</bundles_post_ra>
